<compile_context>
chip_gen: v7x
topology: tpu7x:2x2x1
jax: 0.10.0
libtpu: 0.0.40
codegen_flags: <defaults>
</compile_context>

<pallas_src>
from functools import partial

import jax
import jax.numpy as jnp
from jax.experimental import pallas as pl
from jax.experimental.pallas import tpu as pltpu


# ---------------------------------------------------------------------------
# Tiling heuristics
# ---------------------------------------------------------------------------
def _divisors_mult(n, m):
    """Divisors of n that are multiples of m, descending (empty if n < m)."""
    return sorted((d for d in range(m, n + 1, m) if n % d == 0), reverse=True)


def _pick_gate_tiles(B, C, L, itemsize):
    """(batch tile, lane tile) for the pooling pass over x:(B, C, L)."""
    if L % 128 == 0:
        tl = next(d for d in _divisors_mult(L, 128) if d <= 1024)
    else:
        tl = L                                      # full-extent lane block
    if B % 8 == 0:
        # The (B, C) gate output block needs a leading dim that is a multiple
        # of 8 (or all of B); keep >= 2 batch steps for v7x when B allows.
        cap_b = max(8, (1024 * 1024) // max(1, C * tl * itemsize))
        cands = [d for d in _divisors_mult(B, 8)
                 if d <= cap_b and d <= max(8, B // 2)]
        tb = cands[0] if cands else 8
    else:
        tb = B
    return tb, tl


def _pick_add_tiles(R, L, itemsize):
    """(row tile, lane tile) for the broadcast-add pass over x2:(R=B*C, L)."""
    row_quant = 8 if R % 8 == 0 else R              # sublane tiling quantum

    if L % 128 == 0:
        lane_cap = min(2048, max(128, (512 * 1024) // (row_quant * itemsize)))
        tl = next(d for d in _divisors_mult(L, 128) if d <= lane_cap)
    else:
        # TODO(synk): L not a multiple of 128 lowers to lane-masked stores; a
        # padded / (B, C*L)-flattened view would be better for large such L.
        tl = L
    n_l = L // tl

    if row_quant == R:                              # rows not 8-divisible
        return R, tl

    # Largest row tile (divisor of R, multiple of 8) with ~<=512 KiB per tile
    # and >= 8 grid steps (>= 2 per v7x TensorCore), preferring an even count.
    cap_rows = max(8, (512 * 1024) // (tl * itemsize))
    cands = [d for d in _divisors_mult(R, 8) if d <= cap_rows] or [8]
    nsteps = lambda tr: (R // tr) * n_l
    for need_even in (True, False):
        for tr in cands:                            # descending: biggest tile first
            s = nsteps(tr)
            if s >= 8 and (s % 2 == 0 or not need_even):
                return tr, tl
    for tr in reversed(cands):                      # small problem: most steps
        if nsteps(tr) % 2 == 0:
            return tr, tl
    return cands[-1], tl


# ---------------------------------------------------------------------------
# Pass 1: excitation gate  (B, C, L) -> (B, C)
# ---------------------------------------------------------------------------
def _gate_kernel(x_ref, w1t_ref, b1_ref, w2t_ref, b2_ref, gate_ref, acc_ref,
                 *, inv_len):
    l = pl.program_id(1)

    @pl.when(l == 0)
    def _init():
        acc_ref[...] = jnp.zeros_like(acc_ref)

    # Partial sum over this L tile, accumulated in f32 (bf16-safe over long L).
    acc_ref[...] += jnp.sum(x_ref[...].astype(jnp.float32), axis=-1)

    @pl.when(l == pl.num_programs(1) - 1)
    def _finalize():
        pooled = acc_ref[...] * inv_len                         # (tb, C) mean
        # The 1x1 convs on the length-1 pooled signal are two tiny matmuls.
        # They run once per batch tile (off the streaming critical path), so
        # the trivially small dot keeps the lowering simple and is free here.
        h = jnp.dot(pooled, w1t_ref[...],
                    preferred_element_type=jnp.float32) + b1_ref[...]
        h = jnp.maximum(h, 0.0)                                 # ReLU, (tb, Cmid)
        z = jnp.dot(h, w2t_ref[...],
                    preferred_element_type=jnp.float32) + b2_ref[...]
        gate_ref[...] = jax.nn.sigmoid(z)                       # (tb, C), EUP


# ---------------------------------------------------------------------------
# Pass 2: lane-dense broadcast-add  y = x + gate  on x viewed as (B*C, L)
# ---------------------------------------------------------------------------
def _add_gate_kernel(x_ref, g_ref, o_ref):
    # Read, add, store immediately: no long live range on the big tile, so the
    # load and store streams overlap under the HBM DMA.
    o_ref[...] = x_ref[...] + g_ref[...].astype(o_ref.dtype)


# ---------------------------------------------------------------------------
# Wrapper
# ---------------------------------------------------------------------------
def se_block(x, w1, b1, w2, b2):
    """x: (B, C, L); conv1 w1: (Cmid, C), b1: (Cmid,); conv2 w2: (C, Cmid), b2: (C,)."""
    B, C, L = x.shape
    Cmid = w1.shape[0]
    itemsize = x.dtype.itemsize

    # ------------- Pass 1: tiny (B, C) excitation gate -------------
    tb, tlg = _pick_gate_tiles(B, C, L, itemsize)
    resident = dict(pipeline_mode=pl.Buffered(1))   # constant blocks: one buffer
    gate = pl.pallas_call(
        partial(_gate_kernel, inv_len=1.0 / L),
        out_shape=jax.ShapeDtypeStruct((B, C), jnp.float32),
        grid_spec=pltpu.PrefetchScalarGridSpec(
            num_scalar_prefetch=0,
            grid=(B // tb, L // tlg),
            in_specs=[
                pl.BlockSpec((tb, C, tlg), lambda b, l: (b, 0, l)),        # x
                pl.BlockSpec((C, Cmid), lambda b, l: (0, 0), **resident),  # w1^T
                pl.BlockSpec((1, Cmid), lambda b, l: (0, 0), **resident),  # b1
                pl.BlockSpec((Cmid, C), lambda b, l: (0, 0), **resident),  # w2^T
                pl.BlockSpec((1, C), lambda b, l: (0, 0), **resident),     # b2
            ],
            out_specs=pl.BlockSpec((tb, C), lambda b, l: (b, 0)),
            scratch_shapes=[pltpu.VMEM((tb, C), jnp.float32)],
        ),
        compiler_params=pltpu.CompilerParams(
            dimension_semantics=("parallel", "arbitrary")),
    )(x, w1.T, b1.reshape(1, Cmid), w2.T, b2.reshape(1, C))

    # ------------- Pass 2: lane-dense broadcast-add over (B*C, L) -------------
    R = B * C
    tr, tl = _pick_add_tiles(R, L, itemsize)
    y2 = pl.pallas_call(
        _add_gate_kernel,
        out_shape=jax.ShapeDtypeStruct((R, L), x.dtype),
        grid_spec=pltpu.PrefetchScalarGridSpec(
            num_scalar_prefetch=0,
            grid=(R // tr, L // tl),
            in_specs=[
                pl.BlockSpec((tr, tl), lambda r, l: (r, l)),   # x rows
                pl.BlockSpec((tr, 1), lambda r, l: (r, 0)),    # per-row gate
            ],
            out_specs=pl.BlockSpec((tr, tl), lambda r, l: (r, l)),
        ),
        compiler_params=pltpu.CompilerParams(
            dimension_semantics=("parallel", "parallel")),
    )(x.reshape(R, L), gate.reshape(R, 1))
    return y2.reshape(B, C, L)


def se_block_ref(x, w1, b1, w2, b2):
    """Plain-JAX reference (matches the PyTorch forward, additive combine)."""
    pooled = jnp.mean(x, axis=-1)                                        # (B, C)
    h = jnp.maximum(jnp.dot(pooled, w1.T, precision="highest") + b1, 0.0)
    gate = jax.nn.sigmoid(jnp.dot(h, w2.T, precision="highest") + b2)    # (B, C)
    return x + gate[:, :, None]


if __name__ == "__main__":
    # in_layer = C = 16, out_layer = 16 -> Cmid = out_layer // 8 = 2.
    # L = 128 so the streaming pass runs on lane-dense (multiple-of-128) tiles.
    B, C, L = 4, 16, 128
    out_layer = 16
    Cmid = out_layer // 8

    key = jax.random.PRNGKey(0)
    kx, k1, k2, k3, k4 = jax.random.split(key, 5)

    x = jax.random.normal(kx, (B, C, L), dtype=jnp.float32)
    # Conv1d kernel_size=1 weights with the trailing length-1 dim squeezed:
    #   conv1.weight (Cmid, C, 1) -> (Cmid, C); conv2.weight (C, Cmid, 1) -> (C, Cmid)
    w1 = jax.random.normal(k1, (Cmid, C), dtype=jnp.float32) * 0.1
    b1 = jax.random.normal(k2, (Cmid,), dtype=jnp.float32) * 0.1
    w2 = jax.random.normal(k3, (C, Cmid), dtype=jnp.float32) * 0.1
    b2 = jax.random.normal(k4, (C,), dtype=jnp.float32) * 0.1

    out = jax.block_until_ready(se_block(x, w1, b1, w2, b2))

    ref = se_block_ref(x, w1, b1, w2, b2)
    assert out.shape == ref.shape
    assert jnp.allclose(out, ref, atol=1e-4, rtol=1e-4), "mismatch vs reference"

    print("KERNEL_OK")
</pallas_src>

<mosaic_0001>
module attributes {stable_mosaic.version = 11 : i64} {
  func.func @_gate_kernel(%arg0: i32, %arg1: i32, %arg2: memref<4x16x128xf32, #tpu.memory_space<vmem>>, %arg3: memref<16x2xf32, #tpu.memory_space<vmem>>, %arg4: memref<1x2xf32, #tpu.memory_space<vmem>>, %arg5: memref<2x16xf32, #tpu.memory_space<vmem>>, %arg6: memref<1x16xf32, #tpu.memory_space<vmem>>, %arg7: memref<4x16xf32, #tpu.memory_space<vmem>>, %arg8: memref<4x16xf32, #tpu.memory_space<vmem>>) attributes {dimension_semantics = [#tpu.dimension_semantics<parallel>, #tpu.dimension_semantics<arbitrary>], iteration_bounds = array<i64: 1, 1>, scalar_prefetch = 0 : i64, scratch_operands = 1 : i64, tpu.core_type = #tpu.core_type<tc>, window_params = [{transform_indices = @transform_0, window_bounds = array<i64: 4, 16, 128>}, {pipeline_mode = #tpu.pipeline_mode<synchronous>, transform_indices = @transform_1, window_bounds = array<i64: 16, 2>}, {pipeline_mode = #tpu.pipeline_mode<synchronous>, transform_indices = @transform_2, window_bounds = array<i64: 1, 2>}, {pipeline_mode = #tpu.pipeline_mode<synchronous>, transform_indices = @transform_3, window_bounds = array<i64: 2, 16>}, {pipeline_mode = #tpu.pipeline_mode<synchronous>, transform_indices = @transform_4, window_bounds = array<i64: 1, 16>}, {transform_indices = @transform_5, window_bounds = array<i64: 4, 16>}]} {
    %c0_i32 = arith.constant 0 : i32
    %0 = arith.cmpi eq, %arg1, %c0_i32 : i32
    %1 = arith.extui %0 : i1 to i32
    %c0_i32_0 = arith.constant 0 : i32
    %2 = arith.cmpi ne, %1, %c0_i32_0 : i32
    scf.if %2 {
      %cst_9 = arith.constant 0.000000e+00 : f32
      %11 = vector.broadcast %cst_9 : f32 to vector<4x16xf32>
      %c0_10 = arith.constant 0 : index
      %c0_11 = arith.constant 0 : index
      %12 = vector.load %arg8[%c0_10, %c0_11] : memref<4x16xf32, #tpu.memory_space<vmem>>, vector<4x16xf32>
      tpu.vector_store %arg8[%c0_10, %c0_11], %11 {strides = array<i32>} : memref<4x16xf32, #tpu.memory_space<vmem>>, vector<4x16xf32>,
    } else {
    }
    %c0 = arith.constant 0 : index
    %c0_1 = arith.constant 0 : index
    %3 = vector.load %arg8[%c0, %c0_1] : memref<4x16xf32, #tpu.memory_space<vmem>>, vector<4x16xf32>
    %c0_2 = arith.constant 0 : index
    %c0_3 = arith.constant 0 : index
    %c0_4 = arith.constant 0 : index
    %4 = vector.load %arg2[%c0_2, %c0_3, %c0_4] : memref<4x16x128xf32, #tpu.memory_space<vmem>>, vector<4x16x128xf32>
    %cst = arith.constant dense<0.000000e+00> : vector<4x16xf32>
    %5 = vector.multi_reduction <add>, %4, %cst [2] : vector<4x16x128xf32> to vector<4x16xf32>
    %6 = arith.addf %3, %5 : vector<4x16xf32>
    %c0_5 = arith.constant 0 : index
    %c0_6 = arith.constant 0 : index
    %7 = vector.load %arg8[%c0_5, %c0_6] : memref<4x16xf32, #tpu.memory_space<vmem>>, vector<4x16xf32>
    tpu.vector_store %arg8[%c0_5, %c0_6], %6 {strides = array<i32>} : memref<4x16xf32, #tpu.memory_space<vmem>>, vector<4x16xf32>,
    %c0_i32_7 = arith.constant 0 : i32
    %8 = arith.cmpi eq, %arg1, %c0_i32_7 : i32
    %9 = arith.extui %8 : i1 to i32
    %c0_i32_8 = arith.constant 0 : i32
    %10 = arith.cmpi ne, %9, %c0_i32_8 : i32
    scf.if %10 {
      %c0_9 = arith.constant 0 : index
      %c0_10 = arith.constant 0 : index
      %11 = vector.load %arg8[%c0_9, %c0_10] : memref<4x16xf32, #tpu.memory_space<vmem>>, vector<4x16xf32>
      %cst_11 = arith.constant 7.812500e-03 : f32
      %12 = vector.broadcast %cst_11 : f32 to vector<4x16xf32>
      %13 = arith.mulf %11, %12 : vector<4x16xf32>
      %c0_12 = arith.constant 0 : index
      %c0_13 = arith.constant 0 : index
      %14 = vector.load %arg3[%c0_12, %c0_13] : memref<16x2xf32, #tpu.memory_space<vmem>>, vector<16x2xf32>
      %cst_14 = arith.constant dense<0.000000e+00> : vector<4x2xf32>
      %15 = tpu.matmul %13, %14, %cst_14 {dimension_numbers = #tpu.dot_dimension_numbers<[1], [0], [0], [1], [0, 0, 1, 1], [], []>} : vector<4x16xf32>, vector<16x2xf32>, vector<4x2xf32> -> vector<4x2xf32>
      %c0_15 = arith.constant 0 : index
      %c0_16 = arith.constant 0 : index
      %16 = vector.load %arg4[%c0_15, %c0_16] : memref<1x2xf32, #tpu.memory_space<vmem>>, vector<1x2xf32>
      %17 = vector.broadcast %16 : vector<1x2xf32> to vector<4x2xf32>
      %18 = arith.addf %15, %17 : vector<4x2xf32>
      %cst_17 = arith.constant 0.000000e+00 : f32
      %19 = vector.broadcast %cst_17 : f32 to vector<4x2xf32>
      %20 = arith.maximumf %18, %19 : vector<4x2xf32>
      %c0_18 = arith.constant 0 : index
      %c0_19 = arith.constant 0 : index
      %21 = vector.load %arg5[%c0_18, %c0_19] : memref<2x16xf32, #tpu.memory_space<vmem>>, vector<2x16xf32>
      %cst_20 = arith.constant dense<0.000000e+00> : vector<4x16xf32>
      %22 = tpu.matmul %20, %21, %cst_20 {dimension_numbers = #tpu.dot_dimension_numbers<[1], [0], [0], [1], [0, 0, 1, 1], [], []>} : vector<4x2xf32>, vector<2x16xf32>, vector<4x16xf32> -> vector<4x16xf32>
      %c0_21 = arith.constant 0 : index
      %c0_22 = arith.constant 0 : index
      %23 = vector.load %arg6[%c0_21, %c0_22] : memref<1x16xf32, #tpu.memory_space<vmem>>, vector<1x16xf32>
      %24 = vector.broadcast %23 : vector<1x16xf32> to vector<4x16xf32>
      %25 = arith.addf %22, %24 : vector<4x16xf32>
      %26 = arith.negf %25 : vector<4x16xf32>
      %27 = math.exp %26 : vector<4x16xf32>
      %cst_23 = arith.constant 1.000000e+00 : f32
      %28 = vector.broadcast %cst_23 : f32 to vector<4x16xf32>
      %29 = arith.addf %28, %27 : vector<4x16xf32>
      %30 = arith.divf %28, %29 : vector<4x16xf32>
      %c0_24 = arith.constant 0 : index
      %c0_25 = arith.constant 0 : index
      %31 = vector.load %arg7[%c0_24, %c0_25] : memref<4x16xf32, #tpu.memory_space<vmem>>, vector<4x16xf32>
      tpu.vector_store %arg7[%c0_24, %c0_25], %30 {strides = array<i32>} : memref<4x16xf32, #tpu.memory_space<vmem>>, vector<4x16xf32>,
    } else {
    }
    return
  }
  func.func @transform_0(%arg0: i32, %arg1: i32) -> (i32, i32, i32) {
    %c0_i32 = arith.constant 0 : i32
    %c0_i32_0 = arith.constant 0 : i32
    return %arg0, %c0_i32, %arg1 : i32, i32, i32
  }
  func.func @transform_1(%arg0: i32, %arg1: i32) -> (i32, i32) {
    %c0_i32 = arith.constant 0 : i32
    %c0_i32_0 = arith.constant 0 : i32
    %c0_i32_1 = arith.constant 0 : i32
    return %c0_i32, %c0_i32_0 : i32, i32
  }
  func.func @transform_2(%arg0: i32, %arg1: i32) -> (i32, i32) {
    %c0_i32 = arith.constant 0 : i32
    %c0_i32_0 = arith.constant 0 : i32
    %c0_i32_1 = arith.constant 0 : i32
    return %c0_i32, %c0_i32_0 : i32, i32
  }
  func.func @transform_3(%arg0: i32, %arg1: i32) -> (i32, i32) {
    %c0_i32 = arith.constant 0 : i32
    %c0_i32_0 = arith.constant 0 : i32
    %c0_i32_1 = arith.constant 0 : i32
    return %c0_i32, %c0_i32_0 : i32, i32
  }
  func.func @transform_4(%arg0: i32, %arg1: i32) -> (i32, i32) {
    %c0_i32 = arith.constant 0 : i32
    %c0_i32_0 = arith.constant 0 : i32
    %c0_i32_1 = arith.constant 0 : i32
    return %c0_i32, %c0_i32_0 : i32, i32
  }
  func.func @transform_5(%arg0: i32, %arg1: i32) -> (i32, i32) {
    %c0_i32 = arith.constant 0 : i32
    %c0_i32_0 = arith.constant 0 : i32
    return %arg0, %c0_i32 : i32, i32
  }
}

</mosaic_0001>

<bundles_post_ra>
// kernel: tpu_custom_call.1
= control target key start
LH: loop header
LB: loop body
LE: loop exit
PB: predicated region body
PF: predicated region fallthrough
CT: control target
= control target key end

     0   :  { %10 = vsyncpa [#allocation4], 0  ;;  %s489_s0 = inlined_call_operand.hbm [shape: f32[4,16,128], index: 0, kind: input, shape index: {}]   ;;  %s490_s1 = inlined_call_operand.vmem [shape: f32[16,2], index: 1, kind: input, shape index: {}]   ;;  %s491_s2 = inlined_call_operand.vmem [shape: f32[1,2], index: 2, kind: input, shape index: {}]   ;;  %s492_s3 = inlined_call_operand.vmem [shape: f32[2,16], index: 3, kind: input, shape index: {}]   ;;  %s493_s4 = inlined_call_operand.vmem [shape: f32[1,16], index: 4, kind: input, shape index: {}]   ;;  %s494_s5 = inlined_call_operand.hbm [shape: f32[4,16], index: 5, kind: output, shape index: {}]  }
   0x1   :  { %11 = vsyncpa [#allocation5], 0  ;;  %s406_s18 = smov [#allocation3]   ;;  %s358_s22 = scalar_lea.hbm %s489_s0, 1024 }
   0x2   :  { %s17_s19 = sshll.u32 %s406_s18, 4  ;;  %p359_p0 = scmp.ne.s32.totalorder %s489_s0, %s358_s22  ;;  %s18_s19 = int_to_ptr.vmem [resolvable:$true] %s17_s19 }
   0x3   :  { %p362_p1 = scmp.lt.u32.totalorder %s358_s22, %s489_s0 }
   0x5   :  { %p364_p2 = pnand %p362_p1, %p359_p0 }
   0x7   :  { %367 = shalt.err (!%p364_p2)
}
   0x8   :  { %s368_s27 = scalar_lea.vmem %s18_s19, 1024  ;;  %p373_p4 = scmp.lt.s32.totalorder %s18_s19, %s18_s19 }
   0x9   :  { %p369_p3 = scmp.ne.s32.totalorder %s18_s19, %s368_s27  ;;  %p374_p5 = scmp.lt.s32.totalorder %s368_s27, %s368_s27 }
   0xb   :  { %p375_p6 = por %p374_p5, %p373_p4 }
   0xd   :  { %p376_p7 = pnand %p375_p6, %p369_p3 }
   0xf   :  { %379 = shalt.err (!%p376_p7)
}
  0x10   :  { %s407_s28 = smov 128   ;;  %s408_s29 = smov 8  }
  0x11   :  { %23 = dma.hbm_to_vmem [thread:$0]  %s489_s0, 1024, %s18_s19, [#allocation4], %s407_s28, %s407_s28, %s408_s29  }
  0x12   :  { %402 = dma.done.wait [#allocation4], 1024  }
  0x13   :  { %403 = vsyncadd [#allocation4], 4294966272  ;;  %v44_v0 = vld [vmem:[#allocation3 + $0x10] sm:$0xff]  ;;  %v42_v1 = vld [vmem:[#allocation3] sm:$0xff]  ;;  %vm39_vm0 = vcmask 125952   ;;  %v409_v8 = vmov 0.0   ;;  %v74_v13 = vlaneseq }
  0x14   :  { %54 = vadd.xlane.f32.xlu1 %v44_v0  ;;  %50 = vadd.xlane.f32.xlu0 %v42_v1  ;;  %v45_v2 = vld [vmem:[#allocation3 + $0x18] sm:$0xff]  ;;  %v43_v3 = vld [vmem:[#allocation3 + $0x8] sm:$0xff]  ;;  %v46_v5 = vld [vmem:[#allocation3 + $0x20] sm:$0xff]  ;;  %40 = vst.msk [vmem:[#allocation2] sm:$0xf] %vm39_vm0, %v409_v8  ;;  %v410_v11 = vmov 0.0|0.0  }
  0x15   :  { %v47_v4 = vld [vmem:[#allocation3 + $0x28] sm:$0xff]  ;;  %v49_v6 = vld [vmem:[#allocation3 + $0x38] sm:$0xff]  ;;  %v48_v7 = vld [vmem:[#allocation3 + $0x30] sm:$0xff]  ;;  %339 = vmatprep.subr.mxu1 %v409_v8  ;;  %344 = vmatprep.subr.bf16.mxu0 %v410_v11  ;;  %vm411_vm1 = vmmov 0   ;;  %v75_v14 = vand.u32 127, %v74_v13  ;;  %v77_v18 = vshrl.u32 %v74_v13, 7 }
  0x16   :  { %v129_v9 = vld [vmem:[%s490_s1] sm:$0xff]  ;;  %v130_v10 = vld [vmem:[%s490_s1 + $0x8] sm:$0xff]  ;;  %336 = vmatprep.mubr.msk.f32.mxu0 %vm411_vm1, %v409_v8  ;;  %341 = vmatprep.mubr.msk.f32.mxu1 %vm411_vm1, %v409_v8  ;;  %vm85_vm2 = vcmask 130112   ;;  %vm114_vm3 = vcmask 1041409   ;;  %vm116_vm4 = vcmask 1042434   ;;  %vm118_vm5 = vcmask 1043459  }
  0x17   :  { %v345_v12 = vpack.c.bf16 %v130_v10, %v129_v9  ;;  %v80_v15 = vadd.s32 4294967288, %v75_v14  ;;  %v78_v22 = vsub.s32 %v75_v14, %v77_v18  ;;  %vm138_vm6 = vcmask 130048   ;;  %v213_v46 = vld [vmem:[%s492_s3] sm:$0x3]  ;;  %s412_s3 = smov [#allocation6]  }
  0x18   :  { %56 = vadd.xlane.f32.xlu1 %v45_v2  ;;  %52 = vadd.xlane.f32.xlu0 %v43_v3  ;;  %vm225_vm7 = vcmask 1041408   ;;  %v321_v47 = vld [vmem:[%s491_s2] ss:$0 sm:$0xff]  ;;  %vm221_vm8 = vcmask 15360   ;;  %s312_s2 = sshll.u32 %s412_s3, 4  ;;  %s313_s2 = int_to_ptr.vmem [resolvable:$true] %s312_s2 }
  0x19   :  { %346 = vmatpush3.bf16.msra.mxu0 %v345_v12  ;;  %v83_v19 = vsub.s32 %v80_v15, %v77_v18  ;;  %340 = vmatpush3.msk.msra.mxu1 %vm225_vm7, %v213_v46  ;;  %v323_v52 = vld [vmem:[%s493_s4] ss:$0 sm:$0xff]  ;;  %s380_s15 = scalar_lea.vmem %s313_s2, 64  ;;  %p385_p9 = scmp.lt.s32.totalorder %s313_s2, %s313_s2 }
  0x1a   :  { %p381_p8 = scmp.ne.s32.totalorder %s313_s2, %s380_s15  ;;  %p386_p10 = scmp.lt.s32.totalorder %s380_s15, %s380_s15 }
  0x1b   :  { %v41_v39 = vld [vmem:[#allocation2] sm:$0xf] }
  0x1c   :  { %60 = vadd.xlane.f32.xlu1 %v47_v4  ;;  %58 = vadd.xlane.f32.xlu0 %v46_v5  ;;  %p387_p11 = por %p386_p10, %p385_p9 }
  0x1e   :  { %p388_p12 = pnand %p387_p11, %p381_p8 }
  0x20   :  { %64 = vadd.xlane.f32.xlu1 %v49_v6  ;;  %62 = vadd.xlane.f32.xlu0 %v48_v7 }
  0xa1   :  { %v55_v16 = vpop.xlane.xlu1 %54  ;;  %v51_v17 = vpop.xlane.xlu0 %50 }
  0xa2   :  { %v90_v27 = vrot.slane %v55_v16, %v78_v22  ;;  %v79_v28 = vrot.slane %v51_v17, %v78_v22 }
  0xa5   :  { %v57_v20 = vpop.xlane.xlu1 %56  ;;  %v53_v21 = vpop.xlane.xlu0 %52 }
  0xa6   :  { %v94_v23 = vrot.slane %v57_v20, %v83_v19  ;;  %v84_v24 = vrot.slane %v53_v21, %v83_v19 }
  0xa8   :  { %v95_v31 = vsel %vm85_vm2, %v94_v23, %v90_v27  ;;  %v86_v32 = vsel %vm85_vm2, %v84_v24, %v79_v28 }
  0xa9   :  { %v61_v25 = vpop.xlane.xlu1 %60  ;;  %v59_v26 = vpop.xlane.xlu0 %58  ;;  %v115_v38 = vsel %vm114_vm3, %v95_v31, %v86_v32 }
  0xaa   :  { %v103_v29 = vrot.slane %v61_v25, %v83_v19  ;;  %v99_v30 = vrot.slane %v59_v26, %v78_v22 }
  0xac   :  { %v104_v33 = vsel %vm85_vm2, %v103_v29, %v99_v30 }
  0xad   :  { %v65_v34 = vpop.xlane.xlu1 %64  ;;  %v63_v35 = vpop.xlane.xlu0 %62  ;;  %v117_v40 = vsel %vm116_vm4, %v104_v33, %v115_v38 }
  0xae   :  { %v112_v36 = vrot.slane %v65_v34, %v83_v19  ;;  %v108_v37 = vrot.slane %v63_v35, %v78_v22 }
  0xb0   :  { %v113_v41 = vsel %vm85_vm2, %v112_v36, %v108_v37 }
  0xb1   :  { %v119_v42 = vsel %vm118_vm5, %v113_v41, %v117_v40 }
  0xb2   :  { %v121_v43 = vadd.f32 %v119_v42, %v41_v39 }
  0xb4   :  { %123 = vst.msk [vmem:[#allocation2] sm:$0xf] %vm39_vm0, %v121_v43 }
  0xbb   :  { %v127_v44 = vld [vmem:[#allocation2] sm:$0xf] }
  0xbc   :  { %v128_v45 = vmul.f32 0.0078125, %v127_v44 }
  0xbe   :  { %337 = vmatmul.mubr.msk.f32.vlgmr.msra.gmra.mrb[0].mxu0 %vm138_vm6, %v128_v45 }
 0x191   :  { %v208_v48 = vpop.f32.mrb[0].mxu0 }
 0x192   :  { %v209_v49 = vadd.f32 %v321_v47, %v208_v48  ;;  %v338_v50 = vpop.f32.mrb[1].mxu0 }
 0x194   :  { %v212_v51 = vmax.f32 %v209_v49, 0.0 }
 0x196   :  { %342 = vmatmul.mubr.msk.f32.vlgmr.msra.gmra.mrb[0].mxu1 %vm221_vm8, %v212_v51 }
 0x269   :  { %v295_v53 = vpop.f32.mrb[0].mxu1 }
 0x26a   :  { %v296_v54 = vadd.f32 %v323_v52, %v295_v53  ;;  %v343_v55 = vpop.f32.mrb[1].mxu1 }
 0x26c   :  { %v326_v56 = vmul.f32 -1.442695, %v296_v54 }
 0x26e   :  { %354 = vpow2.f32 %v326_v56 }
 0x278   :  { %v355_v57 = vpop.eup %354 }
 0x279   :  { %v302_v58 = vadd.f32 1.0, %v355_v57 }
 0x27b   :  { %356 = vrcp.f32 %v302_v58 }
 0x285   :  { %v357_v59 = vpop.eup %356 }
 0x286   :  { %305 = vst.msk [vmem:[#allocation6] sm:$0xf] %vm39_vm0, %v357_v59 }
 0x287   :  { %391 = shalt.err (!%p388_p12)
}
 0x288   :  { %s392_s17 = scalar_lea.hbm %s494_s5, 64 }
 0x289   :  { %p393_p13 = scmp.ne.s32.totalorder %s494_s5, %s392_s17  ;;  %p396_p0 = scmp.lt.u32.totalorder %s392_s17, %s494_s5 }
 0x28b   :  { %p398_p1 = pnand %p396_p0, %p393_p13 }
 0x28d   :  { %401 = shalt.err (!%p398_p1)
}
 0x28e   :  { %315 = dma.vmem_to_hbm [thread:$0]  %s313_s2, 64, %s494_s5, [#allocation5]  }
 0x28f   :  { %404 = dma.done.wait [#allocation5], 64  }
 0x290   :  { %405 = vsyncadd [#allocation5], 4294967232 }
 0x291   :  { %319 = vsyncpa [#allocation4], 1 }
 0x292   :  { %320 = vsyncpa [#allocation5], 1 }

</bundles_post_ra>
